<compile_context>
chip_gen: v7x
topology: tpu7x:2x2x1
jax: 0.10.0
libtpu: 0.0.40
codegen_flags: <defaults>
</compile_context>

<pallas_src>
import functools

import jax
import jax.numpy as jnp
from jax.experimental import pallas as pl
from jax.experimental.pallas import tpu as pltpu

_LANE = 128


def _round_up(n, m):
    return ((n + m - 1) // m) * m


def _cdiv(a, b):
    return -(-a // b)


def _fused_linear_kernel(xT_ref, w_ref, b_ref, out_ref):
    # xT_ref : (F, TB)  -- batch along the 128-wide lane dim (dense, F = 10).
    # w_ref  : (F, 1)   -- fused weight column, resident across the grid.
    # b_ref  : (1, 1)   -- fused bias, resident.
    # out_ref: (1, TB)  -- lane-dense output tile.
    x = xT_ref[...]
    w = w_ref[...]
    # y[b] = sum_f w[f] * x[f, b] : VPU multiply + one sublane (XLU) reduce per
    # lane tile.  The kernel is HBM-bound; no MXU needed for a 10-deep matvec.
    y = jnp.sum(x * w, axis=0, keepdims=True)          # (1, TB), f32
    out_ref[...] = y + b_ref[...]


@functools.partial(jax.jit, static_argnames=("block_b",))
def logistic_reg_forward(x, w1, b1, w2, b2, *, block_b=65536):
    """Forward pass of Logistic_Reg_model.

    x : [B, F] float32 (PyTorch layout, batch-major)
    w1: [64, F], b1: [64], w2: [1, 64], b2: [1]   (PyTorch nn.Linear layout)
    returns [B, 1] float32

    block_b is the max batch-tile width in samples (lanes).  Default 65536
    (~4 MiB f32 x tile) amortises per-grid-step overhead on all generations;
    v5e is already at roofline from ~8-16K, v7x benefits from the larger tile.
    """
    B, F = x.shape
    x = x.astype(jnp.float32)

    # ---- Algebraic fusion of the two affine layers (no nonlinearity between):
    #   (x @ w1.T + b1) @ w2.T + b2  ==  x @ (w2 @ w1).T + (w2 @ b1 + b2)
    w_fused = (w2 @ w1).T.astype(jnp.float32)                     # [F, 1]
    b_fused = (w2 @ b1 + b2).reshape(1, 1).astype(jnp.float32)    # [1, 1]

    # ---- Batch tiling: balanced tiles, batch padded only to a lane multiple
    # (plus a tiny remainder so every tile is full -> no partial-block reads).
    block_b = _round_up(max(block_b, _LANE), _LANE)
    b128 = _round_up(max(B, 1), _LANE)       # batch padded to 128 lanes
    n_groups = b128 // _LANE                 # number of 128-lane groups
    max_groups = block_b // _LANE
    n_tiles = _cdiv(n_groups, max_groups)
    if n_tiles < 2 and n_groups >= 2:
        n_tiles = 2                          # >= 2 parallel steps for v7x megacore
    groups_per_tile = _cdiv(n_groups, n_tiles)
    tb = groups_per_tile * _LANE             # batch tile (lanes), multiple of 128
    b_cov = n_tiles * tb                     # covered batch (>= b128, excess < n_tiles*128)

    # ---- Lane-dense layout: feature on sublanes (unpadded), batch on lanes.
    # allow_input_fusion below lets XLA fuse this transpose/pad producer into
    # the kernel's operand rather than materialising a separate HBM copy.
    xT = jnp.zeros((F, b_cov), jnp.float32).at[:, :B].set(x.T)

    grid = (n_tiles,)

    yT = pl.pallas_call(
        _fused_linear_kernel,
        out_shape=jax.ShapeDtypeStruct((1, b_cov), jnp.float32),
        grid_spec=pltpu.PrefetchScalarGridSpec(
            num_scalar_prefetch=0,
            grid=grid,
            in_specs=[
                pl.BlockSpec((F, tb), lambda i: (0, i)),   # x tile (pipelined)
                pl.BlockSpec((F, 1), lambda i: (0, 0)),    # fused weight (resident)
                pl.BlockSpec((1, 1), lambda i: (0, 0)),    # fused bias (resident)
            ],
            out_specs=pl.BlockSpec((1, tb), lambda i: (0, i)),
        ),
        compiler_params=pltpu.CompilerParams(
            dimension_semantics=("parallel",),     # batch tiles are independent
            vmem_limit_bytes=32 * 1024 * 1024,
            allow_input_fusion=[True, False, False],
        ),
        cost_estimate=pl.CostEstimate(
            flops=2 * b_cov * F,
            transcendentals=0,
            bytes_accessed=b_cov * F * 4 + b_cov * 4 + F * 4 + 4,
        ),
    )(xT, w_fused, b_fused)

    # Strip batch padding, return PyTorch-shaped [B, 1] output.
    return yT[0, :B].reshape(B, 1)


def init_params(key, no_input_features=10, hidden=64):
    # Deterministic init mimicking torch.nn.Linear default (PyTorch layout):
    # U(-1/sqrt(fan_in), 1/sqrt(fan_in)) for weights and biases.
    k1, k2, k3, k4 = jax.random.split(key, 4)
    bound1 = 1.0 / jnp.sqrt(no_input_features)
    bound2 = 1.0 / jnp.sqrt(hidden)
    w1 = jax.random.uniform(k1, (hidden, no_input_features),
                            minval=-bound1, maxval=bound1, dtype=jnp.float32)
    b1 = jax.random.uniform(k2, (hidden,),
                            minval=-bound1, maxval=bound1, dtype=jnp.float32)
    w2 = jax.random.uniform(k3, (1, hidden),
                            minval=-bound2, maxval=bound2, dtype=jnp.float32)
    b2 = jax.random.uniform(k4, (1,),
                            minval=-bound2, maxval=bound2, dtype=jnp.float32)
    return w1, b1, w2, b2


if __name__ == "__main__":
    key = jax.random.PRNGKey(0)
    k_x, k_p, k_x2 = jax.random.split(key, 3)

    B, F = 8, 10
    x = jax.random.normal(k_x, (B, F), dtype=jnp.float32)
    w1, b1, w2, b2 = init_params(k_p, no_input_features=F, hidden=64)

    out = logistic_reg_forward(x, w1, b1, w2, b2)
    out = jax.block_until_ready(out)

    # Reference: exact (unfused) two-layer forward in plain JAX (PyTorch layout).
    ref = (x @ w1.T + b1) @ w2.T + b2
    assert out.shape == (B, 1)
    assert jnp.allclose(out, ref, atol=1e-4, rtol=1e-4)

    # Second check: ragged batch -> balanced 2-step grid (exercises padding,
    # pipelining and the >=2-step megacore path).
    B2 = 300
    x2 = jax.random.normal(k_x2, (B2, F), dtype=jnp.float32)
    out2 = jax.block_until_ready(logistic_reg_forward(x2, w1, b1, w2, b2))
    ref2 = (x2 @ w1.T + b1) @ w2.T + b2
    assert out2.shape == (B2, 1)
    assert jnp.allclose(out2, ref2, atol=1e-4, rtol=1e-4)

    print("KERNEL_OK")
</pallas_src>

<mosaic_0001>
module attributes {stable_mosaic.version = 11 : i64} {
  func.func @_fused_linear_kernel(%arg0: i32, %arg1: memref<10x128xf32, #tpu.memory_space<vmem>>, %arg2: memref<10x1xf32, #tpu.memory_space<vmem>>, %arg3: memref<1x1xf32, #tpu.memory_space<vmem>>, %arg4: memref<1x128xf32, #tpu.memory_space<vmem>>) attributes {dimension_semantics = [#tpu.dimension_semantics<parallel>], iteration_bounds = array<i64: 1>, scalar_prefetch = 0 : i64, scratch_operands = 0 : i64, tpu.core_type = #tpu.core_type<tc>, window_params = [{transform_indices = @transform_0, window_bounds = array<i64: 10, 128>}, {pipeline_mode = #tpu.pipeline_mode<synchronous>, transform_indices = @transform_1, window_bounds = array<i64: 10, 1>}, {pipeline_mode = #tpu.pipeline_mode<synchronous>, transform_indices = @transform_2, window_bounds = array<i64: 1, 1>}, {transform_indices = @transform_3, window_bounds = array<i64: 1, 128>}]} {
    %c0 = arith.constant 0 : index
    %c0_0 = arith.constant 0 : index
    %0 = vector.load %arg1[%c0, %c0_0] : memref<10x128xf32, #tpu.memory_space<vmem>>, vector<10x128xf32>
    %c0_1 = arith.constant 0 : index
    %c0_2 = arith.constant 0 : index
    %1 = vector.load %arg2[%c0_1, %c0_2] : memref<10x1xf32, #tpu.memory_space<vmem>>, vector<10x1xf32>
    %2 = vector.broadcast %1 : vector<10x1xf32> to vector<10x128xf32>
    %3 = arith.mulf %0, %2 : vector<10x128xf32>
    %cst = arith.constant dense<0.000000e+00> : vector<128xf32>
    %4 = vector.multi_reduction <add>, %3, %cst [0] : vector<10x128xf32> to vector<128xf32>
    %5 = vector.shape_cast %4 : vector<128xf32> to vector<1x128xf32>
    %c0_3 = arith.constant 0 : index
    %c0_4 = arith.constant 0 : index
    %6 = vector.load %arg3[%c0_3, %c0_4] : memref<1x1xf32, #tpu.memory_space<vmem>>, vector<1x1xf32>
    %7 = vector.broadcast %6 : vector<1x1xf32> to vector<1x128xf32>
    %8 = arith.addf %5, %7 : vector<1x128xf32>
    %c0_5 = arith.constant 0 : index
    %c0_6 = arith.constant 0 : index
    %9 = vector.load %arg4[%c0_5, %c0_6] : memref<1x128xf32, #tpu.memory_space<vmem>>, vector<1x128xf32>
    tpu.vector_store %arg4[%c0_5, %c0_6], %8 {strides = array<i32>} : memref<1x128xf32, #tpu.memory_space<vmem>>, vector<1x128xf32>,
    return
  }
  func.func @transform_0(%arg0: i32) -> (i32, i32) {
    %c0_i32 = arith.constant 0 : i32
    %c0_i32_0 = arith.constant 0 : i32
    return %c0_i32, %arg0 : i32, i32
  }
  func.func @transform_1(%arg0: i32) -> (i32, i32) {
    %c0_i32 = arith.constant 0 : i32
    %c0_i32_0 = arith.constant 0 : i32
    %c0_i32_1 = arith.constant 0 : i32
    return %c0_i32, %c0_i32_0 : i32, i32
  }
  func.func @transform_2(%arg0: i32) -> (i32, i32) {
    %c0_i32 = arith.constant 0 : i32
    %c0_i32_0 = arith.constant 0 : i32
    %c0_i32_1 = arith.constant 0 : i32
    return %c0_i32, %c0_i32_0 : i32, i32
  }
  func.func @transform_3(%arg0: i32) -> (i32, i32) {
    %c0_i32 = arith.constant 0 : i32
    %c0_i32_0 = arith.constant 0 : i32
    return %c0_i32, %arg0 : i32, i32
  }
}

</mosaic_0001>

<bundles_post_ra>
// kernel: logistic_reg_forward.2
= control target key start
LH: loop header
LB: loop body
LE: loop exit
PB: predicated region body
PF: predicated region fallthrough
CT: control target
= control target key end

     0   :  { %s138_s0 = inlined_call_operand.vmem [shape: f32[10,1], index: 0, kind: input, shape index: {}]   ;;  %s139_s1 = inlined_call_operand.<no memory space> [shape: f32[1,1], index: 1, kind: input, shape index: {}]   ;;  %s140_s2 = inlined_call_operand.vmem [shape: f32[10,8], index: 2, kind: input, shape index: {}]   ;;  %s141_s3 = inlined_call_operand.<no memory space> [shape: f32[], index: 3, kind: input, shape index: {}]   ;;  %s142_s4 = inlined_call_operand.vmem [shape: f32[1,128], index: 4, kind: output, shape index: {}]  }
   0x1   :  { %v9_v0 = vstv %s141_s3  ;;  %v10_v1 = vstv %s139_s1 }
   0x2   :  { %11 = vst [vmem:[#allocation7] sm:$0x1] %v10_v1 }
   0x3   :  { %v49_v2 = vld [vmem:[%s138_s0 + $0x8] sm:$0x3]  ;;  %v24_v4 = vlaneseq  ;;  %v91_v5 = vmov 0   ;;  %v48_v8 = vld [vmem:[%s138_s0] sm:$0xff]  ;;  %vm62_vm2 = vcmask 1041408  }
   0x4   :  { %89 = vset.pattern.permute.xlu0 %v91_v5  ;;  %90 = vset.pattern.permute.xlu1 %v91_v5  ;;  %v87_v9 = vld [vmem:[%s140_s2 + $0x8] sm:$0xff]  ;;  %v18_v11 = vld [vmem:[%s140_s2] sm:$0xff] }
   0x5   :  { %57 = vperm.xlu0 %89, %v49_v2   ;;  %v25_v6 = vand.u32 127, %v24_v4  ;;  %v34_v7 = vshrl.u32 %v24_v4, 7 }
   0x7   :  { %vm27_vm0 = vcmp.lt.s32.totalorder %v25_v6, 8  ;;  %v35_v10 = vadd.s32 8, %v34_v7  ;;  %v79_v25 = vsub.s32 0, %v34_v7 }
   0x8   :  { %v28_v12 = vsel %vm27_vm0, %v18_v11, %v9_v0 }
   0x9   :  { %v71_v3 = vld [vmem:[#allocation7] sm:$0x1]  ;;  %52 = vperm.xlu0 %89, %v48_v8   ;;  %vm36_vm1 = vcmp.lt.s32.totalorder %v35_v10, 10 }
   0xa   :  { %74 = vperm.xlu1 %90, %v71_v3   ;;  %v37_v13 = vsel %vm36_vm1, %v87_v9, %v9_v0 }
   0xb   :  { %v42_v14 = vsel %vm27_vm0, %v37_v13, %v9_v0 }
   0xc   :  { %45 = vst [vmem:[#allocation8 + $0x8] sm:$0xff] %v42_v14 }
  0x13   :  { %v47_v15 = vld [vmem:[#allocation8 + $0x8] sm:$0x3] }
  0x84   :  { %v58_v16 = vpop.permute.xlu0 %57 }
  0x85   :  { %v61_v17 = vmul.f32 %v58_v16, %v47_v15 }
  0x87   :  { %v63_v20 = vsel %vm62_vm2, %v61_v17, 0.0 }
  0x88   :  { %v53_v18 = vpop.permute.xlu0 %52 }
  0x89   :  { %v60_v19 = vmul.f32 %v53_v18, %v28_v12  ;;  %v75_v26 = vpop.permute.xlu1 %74 }
  0x8a   :  { %v80_v29 = vrot.slane %v75_v26, %v79_v25 }
  0x8b   :  { %v64_v21 = vadd.f32 %v63_v20, %v60_v19 }
  0x8d   :  { %v65_v22 = vrot.slane %v64_v21, 4 }
  0x8f   :  { %v66_v23 = vadd.f32 %v65_v22, %v64_v21 }
  0x91   :  { %v67_v24 = vrot.slane %v66_v23, 2 }
  0x93   :  { %v68_v27 = vadd.f32 %v67_v24, %v66_v23 }
  0x95   :  { %v69_v28 = vrot.slane %v68_v27, 1 }
  0x97   :  { %v70_v30 = vadd.f32 %v69_v28, %v68_v27 }
  0x99   :  { %v81_v31 = vadd.f32 %v80_v29, %v70_v30 }
  0x9b   :  { %82 = vst [vmem:[%s142_s4] sm:$0x1] %v81_v31 }

</bundles_post_ra>
